<compile_context>
chip_gen: v5e
topology: v5e:2x2
jax: 0.10.0
libtpu: 0.0.40
codegen_flags: <defaults>
</compile_context>

<pallas_src>
import math

import jax
import jax.numpy as jnp
from jax.experimental import pallas as pl
from jax.experimental.pallas import tpu as pltpu

EPS = 1e-5  # torch.nn.LayerNorm default


def _layernorm(x, g, b):
    mu = jnp.mean(x, axis=-1, keepdims=True)
    var = jnp.mean((x - mu) ** 2, axis=-1, keepdims=True)  # biased variance (torch semantics)
    return (x - mu) * jax.lax.rsqrt(var + EPS) * g + b


def _linear(x, w, b):
    return jnp.dot(x, w, preferred_element_type=jnp.float32) + b


def sa_encoder_kernel(ego_ref, nei_ref,
                      ln_ego_g, ln_ego_b, w_ego, b_ego,
                      ln_nei_g, ln_nei_b, w_nei, b_nei,
                      w_qkv, b_qkv, wo, bo,
                      ln_d1_g, ln_d1_b, w_d, b_d, ln_d2_g, ln_d2_b,
                      ln_f_g, ln_f_b,
                      m_head, mt_head,
                      out_ref):
    tb = ego_ref.shape[0]          # batch tile
    N = nei_ref.shape[1]           # num_neighbours
    D_in = nei_ref.shape[2]
    H = out_ref.shape[-1]
    nh = m_head.shape[-1]          # n_heads
    dh = H // nh
    scale = 1.0 / math.sqrt(dh)

    # ---- embeddings: LayerNorm -> Linear -> ReLU, fully batched ----
    ego_x = jnp.maximum(
        _linear(_layernorm(ego_ref[...], ln_ego_g[...], ln_ego_b[...]),
                w_ego[...], b_ego[...]), 0.0)                                     # (tb, H)
    nei_flat = nei_ref[...].reshape(tb * N, D_in)                                 # (tb*N, D_in)
    nei_x = jnp.maximum(
        _linear(_layernorm(nei_flat, ln_nei_g[...], ln_nei_b[...]),
                w_nei[...], b_nei[...]), 0.0)                                     # (tb*N, H)

    # ---- fused QKV projection (single weight, one matmul per operand set) ----
    qkv_e = _linear(ego_x, w_qkv[...], b_qkv[...])                                # (tb, 3H)
    qkv_n = _linear(nei_x, w_qkv[...], b_qkv[...])                                # (tb*N, 3H)
    q = qkv_e[:, :H]                                                              # query from entry 0 (ego)
    k_e, v_e = qkv_e[:, H:2 * H], qkv_e[:, 2 * H:]                                # (tb, H)
    k_n = qkv_n[:, H:2 * H].reshape(tb, N, H)                                     # (tb, N, H)
    v_n = qkv_n[:, 2 * H:].reshape(tb, N, H)                                      # (tb, N, H)

    # ---- per-head scores via block one-hot projection (no head loop, no lane slicing) ----
    M = m_head[...]                                                               # (H, nh), 0/1 blocks
    Mt = mt_head[...]                                                             # (nh, H)
    s_e = jnp.dot(q * k_e, M, preferred_element_type=jnp.float32) * scale         # (tb, nh)
    qk_n = (q[:, None, :] * k_n).reshape(tb * N, H)
    s_n = (jnp.dot(qk_n, M, preferred_element_type=jnp.float32) * scale
           ).reshape(tb, N, nh)                                                   # (tb, N, nh)

    # softmax over S = {ego} ∪ neighbours, per (batch, head)
    mx = jnp.maximum(s_e, jnp.max(s_n, axis=1))                                   # (tb, nh)
    e_e = jnp.exp(s_e - mx)
    e_n = jnp.exp(s_n - mx[:, None, :])                                           # (tb, N, nh)
    inv = pl.reciprocal(e_e + jnp.sum(e_n, axis=1), approx=True)                  # (tb, nh), EUP
    a_e = jnp.dot(e_e * inv, Mt, preferred_element_type=jnp.float32)              # (tb, H)
    a_n = jnp.dot((e_n * inv[:, None, :]).reshape(tb * N, nh), Mt,
                  preferred_element_type=jnp.float32).reshape(tb, N, H)           # (tb, N, H)

    att = a_e * v_e + jnp.sum(a_n * v_n, axis=1)                                  # (tb, H)
    att = _linear(att, wo[...], bo[...])                                          # output projection

    # ---- dense: LayerNorm -> Linear -> ReLU -> LayerNorm ----
    d = _layernorm(att, ln_d1_g[...], ln_d1_b[...])
    d = jnp.maximum(_linear(d, w_d[...], b_d[...]), 0.0)
    d = _layernorm(d, ln_d2_g[...], ln_d2_b[...])

    # ---- residual with ego embedding + final LayerNorm ----
    out_ref[...] = _layernorm(d + ego_x, ln_f_g[...], ln_f_b[...]).astype(out_ref.dtype)


def _full_spec(a):
    nd = a.ndim
    return pl.BlockSpec(a.shape, lambda i, nd=nd: (0,) * nd)


def sa_encoder_pallas(ego_obs, nei_obs, params, n_heads=4, batch_tile=None):
    B, D_in = ego_obs.shape
    _, N, _ = nei_obs.shape
    H = params["w_ego"].shape[-1]
    dh = H // n_heads

    # batch tiling: one grid step for the tiny demo; for large rollout batches pass a batch_tile
    # (multiple of 8) so grid steps shard across TensorCores via the "parallel" axis.
    tb = B if batch_tile is None else batch_tile
    assert B % tb == 0 and (tb == B or tb % 8 == 0)

    # host-side packing: fused QKV weight/bias + constant one-hot head-projection matrices
    w_qkv = jnp.concatenate([params["wq"], params["wk"], params["wv"]], axis=1)   # (H, 3H)
    b_qkv = jnp.concatenate([params["bq"], params["bk"], params["bv"]], axis=1)   # (1, 3H)
    m_head = (jnp.arange(H)[:, None] // dh == jnp.arange(n_heads)[None, :]).astype(jnp.float32)
    mt_head = m_head.T

    weights = ([params[k] for k in ("ln_ego_g", "ln_ego_b", "w_ego", "b_ego",
                                    "ln_nei_g", "ln_nei_b", "w_nei", "b_nei")]
               + [w_qkv, b_qkv, params["wo"], params["bo"]]
               + [params[k] for k in ("ln_d1_g", "ln_d1_b", "w_d", "b_d",
                                      "ln_d2_g", "ln_d2_b", "ln_f_g", "ln_f_b")]
               + [m_head, mt_head])

    in_specs = ([pl.BlockSpec((tb, D_in), lambda i: (i, 0)),
                 pl.BlockSpec((tb, N, D_in), lambda i: (i, 0, 0))]
                + [_full_spec(w) for w in weights])

    return pl.pallas_call(
        sa_encoder_kernel,
        out_shape=jax.ShapeDtypeStruct((B, H), jnp.float32),
        grid=(B // tb,),
        in_specs=in_specs,
        out_specs=pl.BlockSpec((tb, H), lambda i: (i, 0)),
        compiler_params=pltpu.CompilerParams(dimension_semantics=("parallel",)),
    )(ego_obs, nei_obs, *weights)


# ----------------- deterministic parameter init (synthetic, no checkpoints) -----------------

def _orthogonal(key, out_dim, in_dim, gain):
    a = jax.random.normal(key, (max(out_dim, in_dim), min(out_dim, in_dim)), jnp.float32)
    q, _ = jnp.linalg.qr(a)
    q = q if out_dim >= in_dim else q.T
    return (gain * q[:out_dim, :in_dim]).astype(jnp.float32)   # torch-style (out, in)


def make_params(key, d_in, hidden):
    ks = jax.random.split(key, 8)
    g2 = math.sqrt(2.0)
    p = {}
    # embedding branches: LayerNorm(d_in) -> Linear(d_in, H) (orthogonal, zero bias) -> ReLU
    p["ln_ego_g"] = jnp.ones((1, d_in), jnp.float32); p["ln_ego_b"] = jnp.zeros((1, d_in), jnp.float32)
    p["w_ego"] = _orthogonal(ks[0], hidden, d_in, g2).T          # stored (in, out)
    p["b_ego"] = jnp.zeros((1, hidden), jnp.float32)
    p["ln_nei_g"] = jnp.ones((1, d_in), jnp.float32); p["ln_nei_b"] = jnp.zeros((1, d_in), jnp.float32)
    p["w_nei"] = _orthogonal(ks[1], hidden, d_in, g2).T
    p["b_nei"] = jnp.zeros((1, hidden), jnp.float32)
    # attention projections (deterministic synthetic init)
    scale = 1.0 / math.sqrt(hidden)
    for name, k in zip(("q", "k", "v", "o"), ks[2:6]):
        p[f"w{name}"] = scale * jax.random.normal(k, (hidden, hidden), jnp.float32)
        p[f"b{name}"] = jnp.zeros((1, hidden), jnp.float32)
    # dense: LayerNorm(H) -> Linear(H,H) (orthogonal, zero bias) -> ReLU -> LayerNorm(H)
    p["ln_d1_g"] = jnp.ones((1, hidden), jnp.float32); p["ln_d1_b"] = jnp.zeros((1, hidden), jnp.float32)
    p["w_d"] = _orthogonal(ks[6], hidden, hidden, g2).T
    p["b_d"] = jnp.zeros((1, hidden), jnp.float32)
    p["ln_d2_g"] = jnp.ones((1, hidden), jnp.float32); p["ln_d2_b"] = jnp.zeros((1, hidden), jnp.float32)
    # final layer norm
    p["ln_f_g"] = jnp.ones((1, hidden), jnp.float32); p["ln_f_b"] = jnp.zeros((1, hidden), jnp.float32)
    return p


# ----------------- pure-JAX reference (faithful per-batch / per-head transcription) -----------------

def sa_encoder_ref(ego_obs, nei_obs, p, n_heads=4):
    H = p["w_ego"].shape[-1]
    dh = H // n_heads
    outs = []
    for b in range(ego_obs.shape[0]):
        ego = ego_obs[b:b + 1]
        nei = nei_obs[b]
        ego_x = jnp.maximum(_linear(_layernorm(ego, p["ln_ego_g"], p["ln_ego_b"]), p["w_ego"], p["b_ego"]), 0.0)
        nei_x = jnp.maximum(_linear(_layernorm(nei, p["ln_nei_g"], p["ln_nei_b"]), p["w_nei"], p["b_nei"]), 0.0)
        x = jnp.concatenate([ego_x, nei_x], axis=0)
        q = _linear(x[0:1], p["wq"], p["bq"]); k = _linear(x, p["wk"], p["bk"]); v = _linear(x, p["wv"], p["bv"])
        heads = []
        for h in range(n_heads):
            sl = slice(h * dh, (h + 1) * dh)
            s = jnp.sum(q[:, sl] * k[:, sl], axis=-1, keepdims=True) / math.sqrt(dh)
            a = jax.nn.softmax(s, axis=0)
            heads.append(jnp.sum(a * v[:, sl], axis=0, keepdims=True))
        att = _linear(jnp.concatenate(heads, axis=-1), p["wo"], p["bo"])
        d = _layernorm(att, p["ln_d1_g"], p["ln_d1_b"])
        d = jnp.maximum(_linear(d, p["w_d"], p["b_d"]), 0.0)
        d = _layernorm(d, p["ln_d2_g"], p["ln_d2_b"])
        outs.append(_layernorm(d + ego_x, p["ln_f_g"], p["ln_f_b"])[0])
    return jnp.stack(outs)


if __name__ == "__main__":
    B, N, D_IN, HIDDEN = 2, 4, 8, 32   # obs_shape: compact_ego_state=(8,), compact_nei_state=(4, 8)

    key = jax.random.PRNGKey(0)
    k_ego, k_nei, k_par = jax.random.split(key, 3)
    ego_obs = jax.random.normal(k_ego, (B, D_IN), jnp.float32)
    nei_obs = jax.random.normal(k_nei, (B, N, D_IN), jnp.float32)
    params = make_params(k_par, D_IN, HIDDEN)

    out = jax.block_until_ready(sa_encoder_pallas(ego_obs, nei_obs, params))
    ref = jax.block_until_ready(sa_encoder_ref(ego_obs, nei_obs, params))

    assert out.shape == (B, HIDDEN), out.shape
    # Tolerance tightened 2x vs. previous check but not to 1e-5: XLA's default f32 dot on TPU uses
    # bf16 MXU passes (the reference path) while the Pallas kernel's MXU precision can differ, and
    # the kernel's softmax denominator uses the EUP approximate reciprocal.
    assert jnp.allclose(out, ref, rtol=1e-2, atol=1e-2), float(jnp.max(jnp.abs(out - ref)))

    print("KERNEL_OK")
</pallas_src>

<mosaic_0001>
module attributes {stable_mosaic.version = 11 : i64} {
  func.func @sa_encoder_kernel(%arg0: i32, %arg1: memref<2x8xf32, #tpu.memory_space<vmem>>, %arg2: memref<2x4x8xf32, #tpu.memory_space<vmem>>, %arg3: memref<1x8xf32, #tpu.memory_space<vmem>>, %arg4: memref<1x8xf32, #tpu.memory_space<vmem>>, %arg5: memref<8x32xf32, #tpu.memory_space<vmem>>, %arg6: memref<1x32xf32, #tpu.memory_space<vmem>>, %arg7: memref<1x8xf32, #tpu.memory_space<vmem>>, %arg8: memref<1x8xf32, #tpu.memory_space<vmem>>, %arg9: memref<8x32xf32, #tpu.memory_space<vmem>>, %arg10: memref<1x32xf32, #tpu.memory_space<vmem>>, %arg11: memref<32x96xf32, #tpu.memory_space<vmem>>, %arg12: memref<1x96xf32, #tpu.memory_space<vmem>>, %arg13: memref<32x32xf32, #tpu.memory_space<vmem>>, %arg14: memref<1x32xf32, #tpu.memory_space<vmem>>, %arg15: memref<1x32xf32, #tpu.memory_space<vmem>>, %arg16: memref<1x32xf32, #tpu.memory_space<vmem>>, %arg17: memref<32x32xf32, #tpu.memory_space<vmem>>, %arg18: memref<1x32xf32, #tpu.memory_space<vmem>>, %arg19: memref<1x32xf32, #tpu.memory_space<vmem>>, %arg20: memref<1x32xf32, #tpu.memory_space<vmem>>, %arg21: memref<1x32xf32, #tpu.memory_space<vmem>>, %arg22: memref<1x32xf32, #tpu.memory_space<vmem>>, %arg23: memref<32x4xf32, #tpu.memory_space<vmem>>, %arg24: memref<4x32xf32, #tpu.memory_space<vmem>>, %arg25: memref<2x32xf32, #tpu.memory_space<vmem>>) attributes {dimension_semantics = [#tpu.dimension_semantics<parallel>], iteration_bounds = array<i64: 1>, scalar_prefetch = 0 : i64, scratch_operands = 0 : i64, tpu.core_type = #tpu.core_type<tc>, window_params = [{transform_indices = @transform_0, window_bounds = array<i64: 2, 8>}, {transform_indices = @transform_1, window_bounds = array<i64: 2, 4, 8>}, {pipeline_mode = #tpu.pipeline_mode<synchronous>, transform_indices = @transform_2, window_bounds = array<i64: 1, 8>}, {pipeline_mode = #tpu.pipeline_mode<synchronous>, transform_indices = @transform_3, window_bounds = array<i64: 1, 8>}, {pipeline_mode = #tpu.pipeline_mode<synchronous>, transform_indices = @transform_4, window_bounds = array<i64: 8, 32>}, {pipeline_mode = #tpu.pipeline_mode<synchronous>, transform_indices = @transform_5, window_bounds = array<i64: 1, 32>}, {pipeline_mode = #tpu.pipeline_mode<synchronous>, transform_indices = @transform_6, window_bounds = array<i64: 1, 8>}, {pipeline_mode = #tpu.pipeline_mode<synchronous>, transform_indices = @transform_7, window_bounds = array<i64: 1, 8>}, {pipeline_mode = #tpu.pipeline_mode<synchronous>, transform_indices = @transform_8, window_bounds = array<i64: 8, 32>}, {pipeline_mode = #tpu.pipeline_mode<synchronous>, transform_indices = @transform_9, window_bounds = array<i64: 1, 32>}, {pipeline_mode = #tpu.pipeline_mode<synchronous>, transform_indices = @transform_10, window_bounds = array<i64: 32, 96>}, {pipeline_mode = #tpu.pipeline_mode<synchronous>, transform_indices = @transform_11, window_bounds = array<i64: 1, 96>}, {pipeline_mode = #tpu.pipeline_mode<synchronous>, transform_indices = @transform_12, window_bounds = array<i64: 32, 32>}, {pipeline_mode = #tpu.pipeline_mode<synchronous>, transform_indices = @transform_13, window_bounds = array<i64: 1, 32>}, {pipeline_mode = #tpu.pipeline_mode<synchronous>, transform_indices = @transform_14, window_bounds = array<i64: 1, 32>}, {pipeline_mode = #tpu.pipeline_mode<synchronous>, transform_indices = @transform_15, window_bounds = array<i64: 1, 32>}, {pipeline_mode = #tpu.pipeline_mode<synchronous>, transform_indices = @transform_16, window_bounds = array<i64: 32, 32>}, {pipeline_mode = #tpu.pipeline_mode<synchronous>, transform_indices = @transform_17, window_bounds = array<i64: 1, 32>}, {pipeline_mode = #tpu.pipeline_mode<synchronous>, transform_indices = @transform_18, window_bounds = array<i64: 1, 32>}, {pipeline_mode = #tpu.pipeline_mode<synchronous>, transform_indices = @transform_19, window_bounds = array<i64: 1, 32>}, {pipeline_mode = #tpu.pipeline_mode<synchronous>, transform_indices = @transform_20, window_bounds = array<i64: 1, 32>}, {pipeline_mode = #tpu.pipeline_mode<synchronous>, transform_indices = @transform_21, window_bounds = array<i64: 1, 32>}, {pipeline_mode = #tpu.pipeline_mode<synchronous>, transform_indices = @transform_22, window_bounds = array<i64: 32, 4>}, {pipeline_mode = #tpu.pipeline_mode<synchronous>, transform_indices = @transform_23, window_bounds = array<i64: 4, 32>}, {transform_indices = @transform_24, window_bounds = array<i64: 2, 32>}]} {
    %c0 = arith.constant 0 : index
    %c0_0 = arith.constant 0 : index
    %0 = vector.load %arg1[%c0, %c0_0] : memref<2x8xf32, #tpu.memory_space<vmem>>, vector<2x8xf32>
    %c0_1 = arith.constant 0 : index
    %c0_2 = arith.constant 0 : index
    %1 = vector.load %arg3[%c0_1, %c0_2] : memref<1x8xf32, #tpu.memory_space<vmem>>, vector<1x8xf32>
    %c0_3 = arith.constant 0 : index
    %c0_4 = arith.constant 0 : index
    %2 = vector.load %arg4[%c0_3, %c0_4] : memref<1x8xf32, #tpu.memory_space<vmem>>, vector<1x8xf32>
    %cst = arith.constant dense<0.000000e+00> : vector<2xf32>
    %3 = vector.multi_reduction <add>, %0, %cst [1] : vector<2x8xf32> to vector<2xf32>
    %4 = vector.shape_cast %3 : vector<2xf32> to vector<2x1xf32>
    %cst_5 = arith.constant 8.000000e+00 : f32
    %5 = vector.broadcast %cst_5 : f32 to vector<2x1xf32>
    %6 = arith.divf %4, %5 : vector<2x1xf32>
    %7 = vector.broadcast %6 : vector<2x1xf32> to vector<2x8xf32>
    %8 = arith.subf %0, %7 : vector<2x8xf32>
    %9 = arith.mulf %8, %8 : vector<2x8xf32>
    %cst_6 = arith.constant dense<0.000000e+00> : vector<2xf32>
    %10 = vector.multi_reduction <add>, %9, %cst_6 [1] : vector<2x8xf32> to vector<2xf32>
    %11 = vector.shape_cast %10 : vector<2xf32> to vector<2x1xf32>
    %cst_7 = arith.constant 8.000000e+00 : f32
    %12 = vector.broadcast %cst_7 : f32 to vector<2x1xf32>
    %13 = arith.divf %11, %12 : vector<2x1xf32>
    %14 = vector.broadcast %6 : vector<2x1xf32> to vector<2x8xf32>
    %15 = arith.subf %0, %14 : vector<2x8xf32>
    %cst_8 = arith.constant 9.99999974E-6 : f32
    %16 = vector.broadcast %cst_8 : f32 to vector<2x1xf32>
    %17 = arith.addf %13, %16 : vector<2x1xf32>
    %18 = math.rsqrt %17 : vector<2x1xf32>
    %19 = vector.broadcast %18 : vector<2x1xf32> to vector<2x8xf32>
    %20 = arith.mulf %15, %19 : vector<2x8xf32>
    %21 = vector.broadcast %1 : vector<1x8xf32> to vector<2x8xf32>
    %22 = arith.mulf %20, %21 : vector<2x8xf32>
    %23 = vector.broadcast %2 : vector<1x8xf32> to vector<2x8xf32>
    %24 = arith.addf %22, %23 : vector<2x8xf32>
    %c0_9 = arith.constant 0 : index
    %c0_10 = arith.constant 0 : index
    %25 = vector.load %arg5[%c0_9, %c0_10] : memref<8x32xf32, #tpu.memory_space<vmem>>, vector<8x32xf32>
    %c0_11 = arith.constant 0 : index
    %c0_12 = arith.constant 0 : index
    %26 = vector.load %arg6[%c0_11, %c0_12] : memref<1x32xf32, #tpu.memory_space<vmem>>, vector<1x32xf32>
    %cst_13 = arith.constant dense<0.000000e+00> : vector<2x32xf32>
    %27 = tpu.matmul %24, %25, %cst_13 {dimension_numbers = #tpu.dot_dimension_numbers<[1], [0], [0], [1], [0, 0, 1, 1], [], []>} : vector<2x8xf32>, vector<8x32xf32>, vector<2x32xf32> -> vector<2x32xf32>
    %28 = vector.broadcast %26 : vector<1x32xf32> to vector<2x32xf32>
    %29 = arith.addf %27, %28 : vector<2x32xf32>
    %cst_14 = arith.constant 0.000000e+00 : f32
    %30 = vector.broadcast %cst_14 : f32 to vector<2x32xf32>
    %31 = arith.maximumf %29, %30 : vector<2x32xf32>
    %c0_15 = arith.constant 0 : index
    %c0_16 = arith.constant 0 : index
    %c0_17 = arith.constant 0 : index
    %32 = vector.load %arg2[%c0_15, %c0_16, %c0_17] : memref<2x4x8xf32, #tpu.memory_space<vmem>>, vector<2x4x8xf32>
    %33 = vector.shape_cast %32 : vector<2x4x8xf32> to vector<8x8xf32>
    %c0_18 = arith.constant 0 : index
    %c0_19 = arith.constant 0 : index
    %34 = vector.load %arg7[%c0_18, %c0_19] : memref<1x8xf32, #tpu.memory_space<vmem>>, vector<1x8xf32>
    %c0_20 = arith.constant 0 : index
    %c0_21 = arith.constant 0 : index
    %35 = vector.load %arg8[%c0_20, %c0_21] : memref<1x8xf32, #tpu.memory_space<vmem>>, vector<1x8xf32>
    %cst_22 = arith.constant dense<0.000000e+00> : vector<8xf32>
    %36 = vector.multi_reduction <add>, %33, %cst_22 [1] : vector<8x8xf32> to vector<8xf32>
    %37 = vector.shape_cast %36 : vector<8xf32> to vector<8x1xf32>
    %cst_23 = arith.constant 8.000000e+00 : f32
    %38 = vector.broadcast %cst_23 : f32 to vector<8x1xf32>
    %39 = arith.divf %37, %38 : vector<8x1xf32>
    %40 = vector.broadcast %39 : vector<8x1xf32> to vector<8x8xf32>
    %41 = arith.subf %33, %40 : vector<8x8xf32>
    %42 = arith.mulf %41, %41 : vector<8x8xf32>
    %cst_24 = arith.constant dense<0.000000e+00> : vector<8xf32>
    %43 = vector.multi_reduction <add>, %42, %cst_24 [1] : vector<8x8xf32> to vector<8xf32>
    %44 = vector.shape_cast %43 : vector<8xf32> to vector<8x1xf32>
    %cst_25 = arith.constant 8.000000e+00 : f32
    %45 = vector.broadcast %cst_25 : f32 to vector<8x1xf32>
    %46 = arith.divf %44, %45 : vector<8x1xf32>
    %47 = vector.broadcast %39 : vector<8x1xf32> to vector<8x8xf32>
    %48 = arith.subf %33, %47 : vector<8x8xf32>
    %cst_26 = arith.constant 9.99999974E-6 : f32
    %49 = vector.broadcast %cst_26 : f32 to vector<8x1xf32>
    %50 = arith.addf %46, %49 : vector<8x1xf32>
    %51 = math.rsqrt %50 : vector<8x1xf32>
    %52 = vector.broadcast %51 : vector<8x1xf32> to vector<8x8xf32>
    %53 = arith.mulf %48, %52 : vector<8x8xf32>
    %54 = vector.broadcast %34 : vector<1x8xf32> to vector<8x8xf32>
    %55 = arith.mulf %53, %54 : vector<8x8xf32>
    %56 = vector.broadcast %35 : vector<1x8xf32> to vector<8x8xf32>
    %57 = arith.addf %55, %56 : vector<8x8xf32>
    %c0_27 = arith.constant 0 : index
    %c0_28 = arith.constant 0 : index
    %58 = vector.load %arg9[%c0_27, %c0_28] : memref<8x32xf32, #tpu.memory_space<vmem>>, vector<8x32xf32>
    %c0_29 = arith.constant 0 : index
    %c0_30 = arith.constant 0 : index
    %59 = vector.load %arg10[%c0_29, %c0_30] : memref<1x32xf32, #tpu.memory_space<vmem>>, vector<1x32xf32>
    %cst_31 = arith.constant dense<0.000000e+00> : vector<8x32xf32>
    %60 = tpu.matmul %57, %58, %cst_31 {dimension_numbers = #tpu.dot_dimension_numbers<[1], [0], [0], [1], [0, 0, 1, 1], [], []>} : vector<8x8xf32>, vector<8x32xf32>, vector<8x32xf32> -> vector<8x32xf32>
    %61 = vector.broadcast %59 : vector<1x32xf32> to vector<8x32xf32>
    %62 = arith.addf %60, %61 : vector<8x32xf32>
    %cst_32 = arith.constant 0.000000e+00 : f32
    %63 = vector.broadcast %cst_32 : f32 to vector<8x32xf32>
    %64 = arith.maximumf %62, %63 : vector<8x32xf32>
    %c0_33 = arith.constant 0 : index
    %c0_34 = arith.constant 0 : index
    %65 = vector.load %arg11[%c0_33, %c0_34] : memref<32x96xf32, #tpu.memory_space<vmem>>, vector<32x96xf32>
    %c0_35 = arith.constant 0 : index
    %c0_36 = arith.constant 0 : index
    %66 = vector.load %arg12[%c0_35, %c0_36] : memref<1x96xf32, #tpu.memory_space<vmem>>, vector<1x96xf32>
    %cst_37 = arith.constant dense<0.000000e+00> : vector<2x96xf32>
    %67 = tpu.matmul %31, %65, %cst_37 {dimension_numbers = #tpu.dot_dimension_numbers<[1], [0], [0], [1], [0, 0, 1, 1], [], []>} : vector<2x32xf32>, vector<32x96xf32>, vector<2x96xf32> -> vector<2x96xf32>
    %68 = vector.broadcast %66 : vector<1x96xf32> to vector<2x96xf32>
    %69 = arith.addf %67, %68 : vector<2x96xf32>
    %c0_38 = arith.constant 0 : index
    %c0_39 = arith.constant 0 : index
    %70 = vector.load %arg11[%c0_38, %c0_39] : memref<32x96xf32, #tpu.memory_space<vmem>>, vector<32x96xf32>
    %c0_40 = arith.constant 0 : index
    %c0_41 = arith.constant 0 : index
    %71 = vector.load %arg12[%c0_40, %c0_41] : memref<1x96xf32, #tpu.memory_space<vmem>>, vector<1x96xf32>
    %cst_42 = arith.constant dense<0.000000e+00> : vector<8x96xf32>
    %72 = tpu.matmul %64, %70, %cst_42 {dimension_numbers = #tpu.dot_dimension_numbers<[1], [0], [0], [1], [0, 0, 1, 1], [], []>} : vector<8x32xf32>, vector<32x96xf32>, vector<8x96xf32> -> vector<8x96xf32>
    %73 = vector.broadcast %71 : vector<1x96xf32> to vector<8x96xf32>
    %74 = arith.addf %72, %73 : vector<8x96xf32>
    %75 = vector.extract_strided_slice %69 {offsets = [0, 0], sizes = [2, 32], strides = [1, 1]} : vector<2x96xf32> to vector<2x32xf32>
    %76 = vector.extract_strided_slice %69 {offsets = [0, 32], sizes = [2, 32], strides = [1, 1]} : vector<2x96xf32> to vector<2x32xf32>
    %77 = vector.extract_strided_slice %69 {offsets = [0, 64], sizes = [2, 32], strides = [1, 1]} : vector<2x96xf32> to vector<2x32xf32>
    %78 = vector.extract_strided_slice %74 {offsets = [0, 32], sizes = [8, 32], strides = [1, 1]} : vector<8x96xf32> to vector<8x32xf32>
    %79 = vector.shape_cast %78 : vector<8x32xf32> to vector<2x4x32xf32>
    %80 = vector.extract_strided_slice %74 {offsets = [0, 64], sizes = [8, 32], strides = [1, 1]} : vector<8x96xf32> to vector<8x32xf32>
    %81 = vector.shape_cast %80 : vector<8x32xf32> to vector<2x4x32xf32>
    %c0_43 = arith.constant 0 : index
    %c0_44 = arith.constant 0 : index
    %82 = vector.load %arg23[%c0_43, %c0_44] : memref<32x4xf32, #tpu.memory_space<vmem>>, vector<32x4xf32>
    %c0_45 = arith.constant 0 : index
    %c0_46 = arith.constant 0 : index
    %83 = vector.load %arg24[%c0_45, %c0_46] : memref<4x32xf32, #tpu.memory_space<vmem>>, vector<4x32xf32>
    %84 = arith.mulf %75, %76 : vector<2x32xf32>
    %cst_47 = arith.constant dense<0.000000e+00> : vector<2x4xf32>
    %85 = tpu.matmul %84, %82, %cst_47 {dimension_numbers = #tpu.dot_dimension_numbers<[1], [0], [0], [1], [0, 0, 1, 1], [], []>} : vector<2x32xf32>, vector<32x4xf32>, vector<2x4xf32> -> vector<2x4xf32>
    %cst_48 = arith.constant 0.353553385 : f32
    %86 = vector.broadcast %cst_48 : f32 to vector<2x4xf32>
    %87 = arith.mulf %85, %86 : vector<2x4xf32>
    %88 = vector.shape_cast %75 : vector<2x32xf32> to vector<2x1x32xf32>
    %89 = vector.broadcast %88 : vector<2x1x32xf32> to vector<2x4x32xf32>
    %90 = arith.mulf %89, %79 : vector<2x4x32xf32>
    %91 = vector.shape_cast %90 : vector<2x4x32xf32> to vector<8x32xf32>
    %cst_49 = arith.constant dense<0.000000e+00> : vector<8x4xf32>
    %92 = tpu.matmul %91, %82, %cst_49 {dimension_numbers = #tpu.dot_dimension_numbers<[1], [0], [0], [1], [0, 0, 1, 1], [], []>} : vector<8x32xf32>, vector<32x4xf32>, vector<8x4xf32> -> vector<8x4xf32>
    %cst_50 = arith.constant 0.353553385 : f32
    %93 = vector.broadcast %cst_50 : f32 to vector<8x4xf32>
    %94 = arith.mulf %92, %93 : vector<8x4xf32>
    %95 = vector.shape_cast %94 : vector<8x4xf32> to vector<2x4x4xf32>
    %cst_51 = arith.constant dense<0xFF800000> : vector<2x4xf32>
    %96 = vector.multi_reduction <maximumf>, %95, %cst_51 [1] : vector<2x4x4xf32> to vector<2x4xf32>
    %97 = arith.maximumf %87, %96 : vector<2x4xf32>
    %98 = arith.subf %87, %97 : vector<2x4xf32>
    %99 = math.exp %98 : vector<2x4xf32>
    %100 = vector.shape_cast %97 : vector<2x4xf32> to vector<2x1x4xf32>
    %101 = vector.broadcast %100 : vector<2x1x4xf32> to vector<2x4x4xf32>
    %102 = arith.subf %95, %101 : vector<2x4x4xf32>
    %103 = math.exp %102 : vector<2x4x4xf32>
    %cst_52 = arith.constant dense<0.000000e+00> : vector<2x4xf32>
    %104 = vector.multi_reduction <add>, %103, %cst_52 [1] : vector<2x4x4xf32> to vector<2x4xf32>
    %105 = arith.addf %99, %104 : vector<2x4xf32>
    %106 = tpu.reciprocal %105 {approx = true} : vector<2x4xf32> -> vector<2x4xf32>
    %107 = arith.mulf %99, %106 : vector<2x4xf32>
    %cst_53 = arith.constant dense<0.000000e+00> : vector<2x32xf32>
    %108 = tpu.matmul %107, %83, %cst_53 {dimension_numbers = #tpu.dot_dimension_numbers<[1], [0], [0], [1], [0, 0, 1, 1], [], []>} : vector<2x4xf32>, vector<4x32xf32>, vector<2x32xf32> -> vector<2x32xf32>
    %109 = vector.shape_cast %106 : vector<2x4xf32> to vector<2x1x4xf32>
    %110 = vector.broadcast %109 : vector<2x1x4xf32> to vector<2x4x4xf32>
    %111 = arith.mulf %103, %110 : vector<2x4x4xf32>
    %112 = vector.shape_cast %111 : vector<2x4x4xf32> to vector<8x4xf32>
    %cst_54 = arith.constant dense<0.000000e+00> : vector<8x32xf32>
    %113 = tpu.matmul %112, %83, %cst_54 {dimension_numbers = #tpu.dot_dimension_numbers<[1], [0], [0], [1], [0, 0, 1, 1], [], []>} : vector<8x4xf32>, vector<4x32xf32>, vector<8x32xf32> -> vector<8x32xf32>
    %114 = vector.shape_cast %113 : vector<8x32xf32> to vector<2x4x32xf32>
    %115 = arith.mulf %108, %77 : vector<2x32xf32>
    %116 = arith.mulf %114, %81 : vector<2x4x32xf32>
    %cst_55 = arith.constant dense<0.000000e+00> : vector<2x32xf32>
    %117 = vector.multi_reduction <add>, %116, %cst_55 [1] : vector<2x4x32xf32> to vector<2x32xf32>
    %118 = arith.addf %115, %117 : vector<2x32xf32>
    %c0_56 = arith.constant 0 : index
    %c0_57 = arith.constant 0 : index
    %119 = vector.load %arg13[%c0_56, %c0_57] : memref<32x32xf32, #tpu.memory_space<vmem>>, vector<32x32xf32>
    %c0_58 = arith.constant 0 : index
    %c0_59 = arith.constant 0 : index
    %120 = vector.load %arg14[%c0_58, %c0_59] : memref<1x32xf32, #tpu.memory_space<vmem>>, vector<1x32xf32>
    %cst_60 = arith.constant dense<0.000000e+00> : vector<2x32xf32>
    %121 = tpu.matmul %118, %119, %cst_60 {dimension_numbers = #tpu.dot_dimension_numbers<[1], [0], [0], [1], [0, 0, 1, 1], [], []>} : vector<2x32xf32>, vector<32x32xf32>, vector<2x32xf32> -> vector<2x32xf32>
    %122 = vector.broadcast %120 : vector<1x32xf32> to vector<2x32xf32>
    %123 = arith.addf %121, %122 : vector<2x32xf32>
    %c0_61 = arith.constant 0 : index
    %c0_62 = arith.constant 0 : index
    %124 = vector.load %arg15[%c0_61, %c0_62] : memref<1x32xf32, #tpu.memory_space<vmem>>, vector<1x32xf32>
    %c0_63 = arith.constant 0 : index
    %c0_64 = arith.constant 0 : index
    %125 = vector.load %arg16[%c0_63, %c0_64] : memref<1x32xf32, #tpu.memory_space<vmem>>, vector<1x32xf32>
    %cst_65 = arith.constant dense<0.000000e+00> : vector<2xf32>
    %126 = vector.multi_reduction <add>, %123, %cst_65 [1] : vector<2x32xf32> to vector<2xf32>
    %127 = vector.shape_cast %126 : vector<2xf32> to vector<2x1xf32>
    %cst_66 = arith.constant 3.200000e+01 : f32
    %128 = vector.broadcast %cst_66 : f32 to vector<2x1xf32>
    %129 = arith.divf %127, %128 : vector<2x1xf32>
    %130 = vector.broadcast %129 : vector<2x1xf32> to vector<2x32xf32>
    %131 = arith.subf %123, %130 : vector<2x32xf32>
    %132 = arith.mulf %131, %131 : vector<2x32xf32>
    %cst_67 = arith.constant dense<0.000000e+00> : vector<2xf32>
    %133 = vector.multi_reduction <add>, %132, %cst_67 [1] : vector<2x32xf32> to vector<2xf32>
    %134 = vector.shape_cast %133 : vector<2xf32> to vector<2x1xf32>
    %cst_68 = arith.constant 3.200000e+01 : f32
    %135 = vector.broadcast %cst_68 : f32 to vector<2x1xf32>
    %136 = arith.divf %134, %135 : vector<2x1xf32>
    %137 = vector.broadcast %129 : vector<2x1xf32> to vector<2x32xf32>
    %138 = arith.subf %123, %137 : vector<2x32xf32>
    %cst_69 = arith.constant 9.99999974E-6 : f32
    %139 = vector.broadcast %cst_69 : f32 to vector<2x1xf32>
    %140 = arith.addf %136, %139 : vector<2x1xf32>
    %141 = math.rsqrt %140 : vector<2x1xf32>
    %142 = vector.broadcast %141 : vector<2x1xf32> to vector<2x32xf32>
    %143 = arith.mulf %138, %142 : vector<2x32xf32>
    %144 = vector.broadcast %124 : vector<1x32xf32> to vector<2x32xf32>
    %145 = arith.mulf %143, %144 : vector<2x32xf32>
    %146 = vector.broadcast %125 : vector<1x32xf32> to vector<2x32xf32>
    %147 = arith.addf %145, %146 : vector<2x32xf32>
    %c0_70 = arith.constant 0 : index
    %c0_71 = arith.constant 0 : index
    %148 = vector.load %arg17[%c0_70, %c0_71] : memref<32x32xf32, #tpu.memory_space<vmem>>, vector<32x32xf32>
    %c0_72 = arith.constant 0 : index
    %c0_73 = arith.constant 0 : index
    %149 = vector.load %arg18[%c0_72, %c0_73] : memref<1x32xf32, #tpu.memory_space<vmem>>, vector<1x32xf32>
    %cst_74 = arith.constant dense<0.000000e+00> : vector<2x32xf32>
    %150 = tpu.matmul %147, %148, %cst_74 {dimension_numbers = #tpu.dot_dimension_numbers<[1], [0], [0], [1], [0, 0, 1, 1], [], []>} : vector<2x32xf32>, vector<32x32xf32>, vector<2x32xf32> -> vector<2x32xf32>
    %151 = vector.broadcast %149 : vector<1x32xf32> to vector<2x32xf32>
    %152 = arith.addf %150, %151 : vector<2x32xf32>
    %cst_75 = arith.constant 0.000000e+00 : f32
    %153 = vector.broadcast %cst_75 : f32 to vector<2x32xf32>
    %154 = arith.maximumf %152, %153 : vector<2x32xf32>
    %c0_76 = arith.constant 0 : index
    %c0_77 = arith.constant 0 : index
    %155 = vector.load %arg19[%c0_76, %c0_77] : memref<1x32xf32, #tpu.memory_space<vmem>>, vector<1x32xf32>
    %c0_78 = arith.constant 0 : index
    %c0_79 = arith.constant 0 : index
    %156 = vector.load %arg20[%c0_78, %c0_79] : memref<1x32xf32, #tpu.memory_space<vmem>>, vector<1x32xf32>
    %cst_80 = arith.constant dense<0.000000e+00> : vector<2xf32>
    %157 = vector.multi_reduction <add>, %154, %cst_80 [1] : vector<2x32xf32> to vector<2xf32>
    %158 = vector.shape_cast %157 : vector<2xf32> to vector<2x1xf32>
    %cst_81 = arith.constant 3.200000e+01 : f32
    %159 = vector.broadcast %cst_81 : f32 to vector<2x1xf32>
    %160 = arith.divf %158, %159 : vector<2x1xf32>
    %161 = vector.broadcast %160 : vector<2x1xf32> to vector<2x32xf32>
    %162 = arith.subf %154, %161 : vector<2x32xf32>
    %163 = arith.mulf %162, %162 : vector<2x32xf32>
    %cst_82 = arith.constant dense<0.000000e+00> : vector<2xf32>
    %164 = vector.multi_reduction <add>, %163, %cst_82 [1] : vector<2x32xf32> to vector<2xf32>
    %165 = vector.shape_cast %164 : vector<2xf32> to vector<2x1xf32>
    %cst_83 = arith.constant 3.200000e+01 : f32
    %166 = vector.broadcast %cst_83 : f32 to vector<2x1xf32>
    %167 = arith.divf %165, %166 : vector<2x1xf32>
    %168 = vector.broadcast %160 : vector<2x1xf32> to vector<2x32xf32>
    %169 = arith.subf %154, %168 : vector<2x32xf32>
    %cst_84 = arith.constant 9.99999974E-6 : f32
    %170 = vector.broadcast %cst_84 : f32 to vector<2x1xf32>
    %171 = arith.addf %167, %170 : vector<2x1xf32>
    %172 = math.rsqrt %171 : vector<2x1xf32>
    %173 = vector.broadcast %172 : vector<2x1xf32> to vector<2x32xf32>
    %174 = arith.mulf %169, %173 : vector<2x32xf32>
    %175 = vector.broadcast %155 : vector<1x32xf32> to vector<2x32xf32>
    %176 = arith.mulf %174, %175 : vector<2x32xf32>
    %177 = vector.broadcast %156 : vector<1x32xf32> to vector<2x32xf32>
    %178 = arith.addf %176, %177 : vector<2x32xf32>
    %179 = arith.addf %178, %31 : vector<2x32xf32>
    %c0_85 = arith.constant 0 : index
    %c0_86 = arith.constant 0 : index
    %180 = vector.load %arg21[%c0_85, %c0_86] : memref<1x32xf32, #tpu.memory_space<vmem>>, vector<1x32xf32>
    %c0_87 = arith.constant 0 : index
    %c0_88 = arith.constant 0 : index
    %181 = vector.load %arg22[%c0_87, %c0_88] : memref<1x32xf32, #tpu.memory_space<vmem>>, vector<1x32xf32>
    %cst_89 = arith.constant dense<0.000000e+00> : vector<2xf32>
    %182 = vector.multi_reduction <add>, %179, %cst_89 [1] : vector<2x32xf32> to vector<2xf32>
    %183 = vector.shape_cast %182 : vector<2xf32> to vector<2x1xf32>
    %cst_90 = arith.constant 3.200000e+01 : f32
    %184 = vector.broadcast %cst_90 : f32 to vector<2x1xf32>
    %185 = arith.divf %183, %184 : vector<2x1xf32>
    %186 = vector.broadcast %185 : vector<2x1xf32> to vector<2x32xf32>
    %187 = arith.subf %179, %186 : vector<2x32xf32>
    %188 = arith.mulf %187, %187 : vector<2x32xf32>
    %cst_91 = arith.constant dense<0.000000e+00> : vector<2xf32>
    %189 = vector.multi_reduction <add>, %188, %cst_91 [1] : vector<2x32xf32> to vector<2xf32>
    %190 = vector.shape_cast %189 : vector<2xf32> to vector<2x1xf32>
    %cst_92 = arith.constant 3.200000e+01 : f32
    %191 = vector.broadcast %cst_92 : f32 to vector<2x1xf32>
    %192 = arith.divf %190, %191 : vector<2x1xf32>
    %193 = vector.broadcast %185 : vector<2x1xf32> to vector<2x32xf32>
    %194 = arith.subf %179, %193 : vector<2x32xf32>
    %cst_93 = arith.constant 9.99999974E-6 : f32
    %195 = vector.broadcast %cst_93 : f32 to vector<2x1xf32>
    %196 = arith.addf %192, %195 : vector<2x1xf32>
    %197 = math.rsqrt %196 : vector<2x1xf32>
    %198 = vector.broadcast %197 : vector<2x1xf32> to vector<2x32xf32>
    %199 = arith.mulf %194, %198 : vector<2x32xf32>
    %200 = vector.broadcast %180 : vector<1x32xf32> to vector<2x32xf32>
    %201 = arith.mulf %199, %200 : vector<2x32xf32>
    %202 = vector.broadcast %181 : vector<1x32xf32> to vector<2x32xf32>
    %203 = arith.addf %201, %202 : vector<2x32xf32>
    %c0_94 = arith.constant 0 : index
    %c0_95 = arith.constant 0 : index
    %204 = vector.load %arg25[%c0_94, %c0_95] : memref<2x32xf32, #tpu.memory_space<vmem>>, vector<2x32xf32>
    tpu.vector_store %arg25[%c0_94, %c0_95], %203 {strides = array<i32>} : memref<2x32xf32, #tpu.memory_space<vmem>>, vector<2x32xf32>,
    return
  }
  func.func @transform_0(%arg0: i32) -> (i32, i32) {
    %c0_i32 = arith.constant 0 : i32
    %c0_i32_0 = arith.constant 0 : i32
    return %arg0, %c0_i32 : i32, i32
  }
  func.func @transform_1(%arg0: i32) -> (i32, i32, i32) {
    %c0_i32 = arith.constant 0 : i32
    %c0_i32_0 = arith.constant 0 : i32
    %c0_i32_1 = arith.constant 0 : i32
    return %arg0, %c0_i32, %c0_i32_0 : i32, i32, i32
  }
  func.func @transform_2(%arg0: i32) -> (i32, i32) {
    %c0_i32 = arith.constant 0 : i32
    %c0_i32_0 = arith.constant 0 : i32
    %c0_i32_1 = arith.constant 0 : i32
    return %c0_i32, %c0_i32_0 : i32, i32
  }
  func.func @transform_3(%arg0: i32) -> (i32, i32) {
    %c0_i32 = arith.constant 0 : i32
    %c0_i32_0 = arith.constant 0 : i32
    %c0_i32_1 = arith.constant 0 : i32
    return %c0_i32, %c0_i32_0 : i32, i32
  }
  func.func @transform_4(%arg0: i32) -> (i32, i32) {
    %c0_i32 = arith.constant 0 : i32
    %c0_i32_0 = arith.constant 0 : i32
    %c0_i32_1 = arith.constant 0 : i32
    return %c0_i32, %c0_i32_0 : i32, i32
  }
  func.func @transform_5(%arg0: i32) -> (i32, i32) {
    %c0_i32 = arith.constant 0 : i32
    %c0_i32_0 = arith.constant 0 : i32
    %c0_i32_1 = arith.constant 0 : i32
    return %c0_i32, %c0_i32_0 : i32, i32
  }
  func.func @transform_6(%arg0: i32) -> (i32, i32) {
    %c0_i32 = arith.constant 0 : i32
    %c0_i32_0 = arith.constant 0 : i32
    %c0_i32_1 = arith.constant 0 : i32
    return %c0_i32, %c0_i32_0 : i32, i32
  }
  func.func @transform_7(%arg0: i32) -> (i32, i32) {
    %c0_i32 = arith.constant 0 : i32
    %c0_i32_0 = arith.constant 0 : i32
    %c0_i32_1 = arith.constant 0 : i32
    return %c0_i32, %c0_i32_0 : i32, i32
  }
  func.func @transform_8(%arg0: i32) -> (i32, i32) {
    %c0_i32 = arith.constant 0 : i32
    %c0_i32_0 = arith.constant 0 : i32
    %c0_i32_1 = arith.constant 0 : i32
    return %c0_i32, %c0_i32_0 : i32, i32
  }
  func.func @transform_9(%arg0: i32) -> (i32, i32) {
    %c0_i32 = arith.constant 0 : i32
    %c0_i32_0 = arith.constant 0 : i32
    %c0_i32_1 = arith.constant 0 : i32
    return %c0_i32, %c0_i32_0 : i32, i32
  }
  func.func @transform_10(%arg0: i32) -> (i32, i32) {
    %c0_i32 = arith.constant 0 : i32
    %c0_i32_0 = arith.constant 0 : i32
    %c0_i32_1 = arith.constant 0 : i32
    return %c0_i32, %c0_i32_0 : i32, i32
  }
  func.func @transform_11(%arg0: i32) -> (i32, i32) {
    %c0_i32 = arith.constant 0 : i32
    %c0_i32_0 = arith.constant 0 : i32
    %c0_i32_1 = arith.constant 0 : i32
    return %c0_i32, %c0_i32_0 : i32, i32
  }
  func.func @transform_12(%arg0: i32) -> (i32, i32) {
    %c0_i32 = arith.constant 0 : i32
    %c0_i32_0 = arith.constant 0 : i32
    %c0_i32_1 = arith.constant 0 : i32
    return %c0_i32, %c0_i32_0 : i32, i32
  }
  func.func @transform_13(%arg0: i32) -> (i32, i32) {
    %c0_i32 = arith.constant 0 : i32
    %c0_i32_0 = arith.constant 0 : i32
    %c0_i32_1 = arith.constant 0 : i32
    return %c0_i32, %c0_i32_0 : i32, i32
  }
  func.func @transform_14(%arg0: i32) -> (i32, i32) {
    %c0_i32 = arith.constant 0 : i32
    %c0_i32_0 = arith.constant 0 : i32
    %c0_i32_1 = arith.constant 0 : i32
    return %c0_i32, %c0_i32_0 : i32, i32
  }
  func.func @transform_15(%arg0: i32) -> (i32, i32) {
    %c0_i32 = arith.constant 0 : i32
    %c0_i32_0 = arith.constant 0 : i32
    %c0_i32_1 = arith.constant 0 : i32
    return %c0_i32, %c0_i32_0 : i32, i32
  }
  func.func @transform_16(%arg0: i32) -> (i32, i32) {
    %c0_i32 = arith.constant 0 : i32
    %c0_i32_0 = arith.constant 0 : i32
    %c0_i32_1 = arith.constant 0 : i32
    return %c0_i32, %c0_i32_0 : i32, i32
  }
  func.func @transform_17(%arg0: i32) -> (i32, i32) {
    %c0_i32 = arith.constant 0 : i32
    %c0_i32_0 = arith.constant 0 : i32
    %c0_i32_1 = arith.constant 0 : i32
    return %c0_i32, %c0_i32_0 : i32, i32
  }
  func.func @transform_18(%arg0: i32) -> (i32, i32) {
    %c0_i32 = arith.constant 0 : i32
    %c0_i32_0 = arith.constant 0 : i32
    %c0_i32_1 = arith.constant 0 : i32
    return %c0_i32, %c0_i32_0 : i32, i32
  }
  func.func @transform_19(%arg0: i32) -> (i32, i32) {
    %c0_i32 = arith.constant 0 : i32
    %c0_i32_0 = arith.constant 0 : i32
    %c0_i32_1 = arith.constant 0 : i32
    return %c0_i32, %c0_i32_0 : i32, i32
  }
  func.func @transform_20(%arg0: i32) -> (i32, i32) {
    %c0_i32 = arith.constant 0 : i32
    %c0_i32_0 = arith.constant 0 : i32
    %c0_i32_1 = arith.constant 0 : i32
    return %c0_i32, %c0_i32_0 : i32, i32
  }
  func.func @transform_21(%arg0: i32) -> (i32, i32) {
    %c0_i32 = arith.constant 0 : i32
    %c0_i32_0 = arith.constant 0 : i32
    %c0_i32_1 = arith.constant 0 : i32
    return %c0_i32, %c0_i32_0 : i32, i32
  }
  func.func @transform_22(%arg0: i32) -> (i32, i32) {
    %c0_i32 = arith.constant 0 : i32
    %c0_i32_0 = arith.constant 0 : i32
    %c0_i32_1 = arith.constant 0 : i32
    return %c0_i32, %c0_i32_0 : i32, i32
  }
  func.func @transform_23(%arg0: i32) -> (i32, i32) {
    %c0_i32 = arith.constant 0 : i32
    %c0_i32_0 = arith.constant 0 : i32
    %c0_i32_1 = arith.constant 0 : i32
    return %c0_i32, %c0_i32_0 : i32, i32
  }
  func.func @transform_24(%arg0: i32) -> (i32, i32) {
    %c0_i32 = arith.constant 0 : i32
    %c0_i32_0 = arith.constant 0 : i32
    return %arg0, %c0_i32 : i32, i32
  }
}

</mosaic_0001>

<bundles_post_ra>
// kernel: tpu_custom_call.1
= control target key start
LH: loop header
LB: loop body
LE: loop exit
PB: predicated region body
PF: predicated region fallthrough
CT: control target
= control target key end

     0   :  { %s1486_s0 = inlined_call_operand.vmem [shape: f32[2,8], index: 0, kind: input, shape index: {}]   ;;  %s1487_s1 = inlined_call_operand.hbm [shape: f32[2,4,8], index: 1, kind: input, shape index: {}]   ;;  %s1488_s2 = inlined_call_operand.vmem [shape: f32[1,8], index: 2, kind: input, shape index: {}]   ;;  %s1489_s3 = inlined_call_operand.hbm [shape: f32[1,8], index: 3, kind: input, shape index: {}]   ;;  %s1490_s4 = inlined_call_operand.hbm [shape: f32[8,32], index: 4, kind: input, shape index: {}]   ;;  %s1491_s5 = inlined_call_operand.hbm [shape: f32[1,32], index: 5, kind: input, shape index: {}]   ;;  %s1492_s6 = inlined_call_operand.hbm [shape: f32[1,8], index: 6, kind: input, shape index: {}]   ;;  %s1493_s7 = inlined_call_operand.hbm [shape: f32[1,8], index: 7, kind: input, shape index: {}]   ;;  %s1494_s8 = inlined_call_operand.hbm [shape: f32[8,32], index: 8, kind: input, shape index: {}]   ;;  %s1495_s9 = inlined_call_operand.vmem [shape: f32[1,32], index: 9, kind: input, shape index: {}]   ;;  %s1496_s10 = inlined_call_operand.vmem [shape: f32[32,96], index: 10, kind: input, shape index: {}]   ;;  %s1497_s11 = inlined_call_operand.vmem [shape: f32[1,96], index: 11, kind: input, shape index: {}]   ;;  %s1498_s12 = inlined_call_operand.hbm [shape: f32[32,32], index: 12, kind: input, shape index: {}]   ;;  %s1499_s13 = inlined_call_operand.vmem [shape: f32[1,32], index: 13, kind: input, shape index: {}]   ;;  %s1500_s14 = inlined_call_operand.vmem [shape: f32[1,32], index: 14, kind: input, shape index: {}]   ;;  %s1501_s15 = inlined_call_operand.vmem [shape: f32[1,32], index: 15, kind: input, shape index: {}]   ;;  %s1502_s16 = inlined_call_operand.hbm [shape: f32[32,32], index: 16, kind: input, shape index: {}]   ;;  %s1503_s17 = inlined_call_operand.vmem [shape: f32[1,32], index: 17, kind: input, shape index: {}]   ;;  %s1504_s18 = inlined_call_operand.vmem [shape: f32[1,32], index: 18, kind: input, shape index: {}]   ;;  %s1505_s19 = inlined_call_operand.vmem [shape: f32[1,32], index: 19, kind: input, shape index: {}]   ;;  %s1506_s20 = inlined_call_operand.vmem [shape: f32[1,32], index: 20, kind: input, shape index: {}]   ;;  %s1507_s21 = inlined_call_operand.vmem [shape: f32[1,32], index: 21, kind: input, shape index: {}]   ;;  %s1508_s22 = inlined_call_operand.vmem [shape: f32[32,4], index: 22, kind: input, shape index: {}]   ;;  %s1509_s23 = inlined_call_operand.vmem [shape: f32[4,32], index: 23, kind: input, shape index: {}]   ;;  %s1510_s24 = inlined_call_operand.hbm [shape: f32[2,32], index: 24, kind: output, shape index: {}]  }
   0x1   :  { %1514 = sst [smem:[#allocation24_spill]] %s1486_s0 }
   0x2   :  { %1515 = sst [smem:[#allocation25_spill]] %s1487_s1 }
   0x3   :  { %1516 = sst [smem:[#allocation26_spill]] %s1488_s2 }
   0x4   :  { %1517 = sst [smem:[#allocation27_spill]] %s1489_s3 }
   0x5   :  { %1518 = sst [smem:[#allocation28_spill]] %s1490_s4 }
   0x6   :  { %1519 = sst [smem:[#allocation29_spill]] %s1491_s5 }
   0x7   :  { %1520 = sst [smem:[#allocation30_spill]] %s1492_s6 }
   0x8   :  { %1521 = sst [smem:[#allocation31_spill]] %s1493_s7 }
   0x9   :  { %1522 = sst [smem:[#allocation32_spill]] %s1494_s8 }
   0xa   :  { %1523 = sst [smem:[#allocation33_spill]] %s1507_s21 }
   0xb   :  { %1524 = sst [smem:[#allocation34_spill]] %s1510_s24 }
   0xc   :  { %29 = vsyncpa [#allocation3], 0 }
   0xd   :  { %30 = vsyncpa [#allocation6], 0 }
   0xe   :  { %31 = vsyncpa [#allocation9], 0 }
   0xf   :  { %32 = vsyncpa [#allocation12], 0 }
  0x10   :  { %33 = vsyncpa [#allocation15], 0  ;;  %s1525_s27 = sld [smem:[#allocation27_spill]] }
  0x16   :  { %s57_s28 = sshll.u32 %s1525_s27, 4  ;;  %s58_s28 = int_to_ptr.hbm [resolvable:$true] %s57_s28 }
  0x17   :  { %34 = vsyncpa [#allocation4], 0  ;;  %s1197_s6 = smov [#allocation5]   ;;  %s1526_s7 = sld [smem:[#allocation29_spill]] }
  0x18   :  { %s59_s2 = sshll.u32 %s1197_s6, 4  ;;  %s1198_s3 = smov [#allocation8]   ;;  %s60_s2 = int_to_ptr.vmem [resolvable:$true] %s59_s2 }
  0x19   :  { %62 = dma.hbm_to_vmem [thread:$0]  %s58_s28, 16, %s60_s2, [#allocation6]  }
  0x1a   :  { %s81_s25 = sshll.u32 %s1198_s3, 4  ;;  %s1527_s1 = sld [smem:[#allocation31_spill]]  ;;  %s82_s25 = int_to_ptr.vmem [resolvable:$true] %s81_s25 }
  0x1b   :  { %s128_s27 = sshll.u32 %s1498_s12, 4  ;;  %s1199_s6 = smov [#allocation11]   ;;  %s129_s27 = int_to_ptr.hbm [resolvable:$true] %s128_s27 }
  0x1c   :  { %s103_s21 = sshll.u32 %s1199_s6, 4  ;;  %s1200_s28 = smov [#allocation14]   ;;  %s104_s21 = int_to_ptr.vmem [resolvable:$true] %s103_s21 }
  0x1d   :  { %s79_s30 = sshll.u32 %s1526_s7, 4  ;;  %s130_s2 = sshll.u32 %s1200_s28, 4  ;;  %s80_s30 = int_to_ptr.hbm [resolvable:$true] %s79_s30  ;;  %s131_s2 = int_to_ptr.vmem [resolvable:$true] %s130_s2 }
  0x1e   :  { %84 = dma.hbm_to_vmem [thread:$0]  %s80_s30, 16, %s82_s25, [#allocation9]  }
  0x1f   :  { %s1511_s29 = smov 128   ;;  %s1202_s0 = smov 8  }
  0x20   :  { %s101_s24 = sshll.u32 %s1527_s1, 4  ;;  %s1528_s3 = sld [smem:[#allocation25_spill]]  ;;  %s102_s24 = int_to_ptr.hbm [resolvable:$true] %s101_s24 }
  0x21   :  { %106 = dma.hbm_to_vmem [thread:$0]  %s102_s24, 16, %s104_s21, [#allocation12]  }
  0x22   :  { %136 = dma.hbm_to_vmem [thread:$0]  %s129_s27, 512, %s131_s2, [#allocation15], %s1511_s29, %s1511_s29, %s1202_s0  }
  0x23   :  { %s1203_s12 = smov [#allocation2]   ;;  %s1529_s21 = sld [smem:[#allocation28_spill]] }
  0x24   :  { %s43_s8 = sshll.u32 %s1203_s12, 4  ;;  %s1512_s5 = smov 64   ;;  %s44_s8 = int_to_ptr.vmem [resolvable:$true] %s43_s8 }
  0x25   :  { %s1205_s26 = smov 4   ;;  %s1206_s6 = smov [#allocation7]  }
  0x26   :  { %s41_s25 = sshll.u32 %s1528_s3, 4  ;;  %s70_s27 = sshll.u32 %s1206_s6, 4  ;;  %s42_s25 = int_to_ptr.hbm [resolvable:$true] %s41_s25  ;;  %s71_s27 = int_to_ptr.vmem [resolvable:$true] %s70_s27 }
  0x27   :  { %49 = dma.hbm_to_vmem [thread:$0]  %s42_s25, 128, %s44_s8, [#allocation3], %s1512_s5, %s1512_s5, %s1205_s26  }
  0x28   :  { %s1530_s7 = sld [smem:[#allocation30_spill]]  ;;  %s1207_s1 = smov [#allocation10]  }
  0x29   :  { %s68_s24 = sshll.u32 %s1529_s21, 4  ;;  %s1531_s29 = sld [smem:[#allocation32_spill]]  ;;  %s69_s24 = int_to_ptr.hbm [resolvable:$true] %s68_s24 }
  0x2a   :  { %73 = dma.hbm_to_vmem [thread:$0]  %s69_s24, 128, %s71_s27, [#allocation6]  }
  0x2b   :  { %s92_s21 = sshll.u32 %s1207_s1, 4  ;;  %s1208_s25 = smov [#allocation13]   ;;  %s93_s21 = int_to_ptr.vmem [resolvable:$true] %s92_s21 }
  0x2c   :  { %s114_s8 = sshll.u32 %s1208_s25, 4  ;;  %s147_s5 = sshll.u32 %s1502_s16, 4  ;;  %s115_s8 = int_to_ptr.vmem [resolvable:$true] %s114_s8  ;;  %s148_s5 = int_to_ptr.hbm [resolvable:$true] %s147_s5 }
  0x2d   :  { %s1209_s28 = smov [#allocation16]   ;;  %s1532_s27 = smov 128  }
  0x2e   :  { %s90_s30 = sshll.u32 %s1530_s7, 4  ;;  %s149_s24 = sshll.u32 %s1209_s28, 4  ;;  %s91_s30 = int_to_ptr.hbm [resolvable:$true] %s90_s30  ;;  %s150_s24 = int_to_ptr.vmem [resolvable:$true] %s149_s24 }
  0x2f   :  { %s112_s4 = sshll.u32 %s1531_s29, 4  ;;  %s113_s4 = int_to_ptr.hbm [resolvable:$true] %s112_s4 }
  0x30   :  { %95 = dma.hbm_to_vmem [thread:$0]  %s91_s30, 16, %s93_s21, [#allocation9]  }
  0x31   :  { %117 = dma.hbm_to_vmem [thread:$0]  %s113_s4, 128, %s115_s8, [#allocation12]  }
  0x32   :  { %155 = dma.hbm_to_vmem [thread:$0]  %s148_s5, 512, %s150_s24, [#allocation15], %s1532_s27, %s1532_s27, %s1202_s0  }
  0x33   :  { %1185 = dma.done.wait [#allocation3], 128  }
  0x34   :  { %1186 = vsyncadd [#allocation3], 4294967168 }
  0x35   :  { %1187 = dma.done.wait [#allocation6], 144  }
  0x36   :  { %1188 = vsyncadd [#allocation6], 4294967152 }
  0x37   :  { %1189 = dma.done.wait [#allocation9], 32  }
  0x38   :  { %1190 = vsyncadd [#allocation9], 4294967264 }
  0x39   :  { %1191 = dma.done.wait [#allocation12], 144  }
  0x3a   :  { %1192 = vsyncadd [#allocation12], 4294967152 }
  0x3b   :  { %1193 = dma.done.wait [#allocation15], 1024  }
  0x3c   :  { %1194 = vsyncadd [#allocation15], 4294966272  ;;  %v277_v0 = vld [vmem:[#allocation2] sm:$0xf]  ;;  %v278_v1 = vld [vmem:[#allocation2 + $0x4] sm:$0xf] }
  0x3d   :  { %283 = vst [vmem:[#allocation1] ss:$2 sm:$0xff] %v277_v0  ;;  %vm252_vm0 = vcmask 64512   ;;  %s1533_s0 = sld [smem:[#allocation24_spill]]  ;;  %vm209_vm1 = vcmask 58368   ;;  %v1210_v6 = vmov 8.0  }
  0x3e   :  { %285 = vst [vmem:[#allocation1 + $0x1] ss:$2 sm:$0xff] %v278_v1  ;;  %923 = vrcp.f32 %v1210_v6  ;;  %v1211_v12 = vmov 839922192   ;;  %v1212_v14 = vmov 1985246804  }
  0x3f   :  { %v294_v13 = vunpack.c.l.s4 %v1211_v12  ;;  %v298_v15 = vunpack.c.l.s4 %v1212_v14  ;;  %v247_v35 = vld [vmem:[#allocation7] sm:$0xff]  ;;  %v356_v38 = vld [vmem:[#allocation13] sm:$0xff]  ;;  %v908_v49 = vld [vmem:[#allocation10] ss:$0 sm:$0xff]  ;;  %s1534_s3 = sld [smem:[#allocation26_spill]]  ;;  %vm398_vm9 = vcmask 261120  }
  0x40   :  { %271 = vmatpush.msra.mxu0 %v247_v35  ;;  %384 = vmatpush.msra.mxu1 %v356_v38  ;;  %v393_v40 = vld [vmem:[%s1496_s10 + $0x18] sm:$0xff]  ;;  %v345_v55 = vrot.slane %v908_v49, 4  ;;  %v391_v12 = vld [vmem:[%s1496_s10 + $0x8] sm:$0xff]  ;;  %s1535_s24 = smov 64   ;;  %vm531_vm10 = vcmask 27648   ;;  %vm548_vm11 = vcmask 1041409  }
  0x41   :  { %v295_v17 = vunpack.c.0.s8 %v294_v13  ;;  %v299_v18 = vunpack.c.0.s8 %v298_v15  ;;  %414 = vmatpush.msra.mxu2 %v393_v40  ;;  %437 = vmatpush.msra.mxu3 %v393_v40  ;;  %v909_v52 = vld [vmem:[#allocation11] ss:$0 sm:$0xff]  ;;  %v390_v13 = vld [vmem:[%s1496_s10] sm:$0xff]  ;;  %v912_v14 = vld [vmem:[#allocation8] ss:$0 sm:$0xff]  ;;  %vm592_vm12 = vcmask 1043456  }
  0x42   :  { %v352_v59 = vrot.slane %v909_v52, 4  ;;  %vm588_vm13 = vcmask 31744   ;;  %vm667_vm14 = vcmask 257024   ;;  %vm720_vm15 = vcmask 254976   ;;  %s1215_s28 = smov [#allocation17]   ;;  %s1537_s27 = sld [smem:[#allocation34_spill]] }
  0x43   :  { %v206_v4 = vld [vmem:[%s1533_s0] sm:$0x3] }
  0x44   :  { %v210_v5 = vsel %vm209_vm1, %v206_v4, 0.0  ;;  %v924_v7 = vpop.eup %923 }
  0x45   :  { %v286_v2 = vld.sshfl [vmem:[#allocation1] sm:$0xff pattern:$0x75316420]  ;;  %v214_v8 = vmul.f32 8.0, %v924_v7  ;;  %vm218_vm2 = vweird.f32 %v924_v7 }
  0x46   :  { %v288_v3 = vsel %vm252_vm0, %v286_v2, 0.0 }
  0x47   :  { %289 = vadd.xlane.f32.xlu0 %v288_v3  ;;  %v215_v9 = vsub.f32 1.0, %v214_v8 }
  0x48   :  { %s863_s16 = sshll.u32 %s1537_s27, 4  ;;  %s864_s16 = int_to_ptr.hbm [resolvable:$true] %s863_s16 }
  0x49   :  { %v216_v10 = vmul.f32 %v924_v7, %v215_v9 }
  0x4b   :  { %v217_v11 = vadd.f32 %v924_v7, %v216_v10 }
  0x4d   :  { %v219_v16 = vsel %vm218_vm2, %v924_v7, %v217_v11  ;;  %v911_v7 = vld [vmem:[#allocation5] ss:$0 sm:$0xff] }
  0x4e   :  { %v392_v11 = vld [vmem:[%s1496_s10 + $0x10] sm:$0xff]  ;;  %s1536_s10 = sld [smem:[#allocation33_spill]] }
  0x4f   :  { %211 = vadd.xlane.f32.xlu0 %v210_v5  ;;  %415 = vmatpush.msra.mxu2 %v392_v11 }
  0x50   :  { %438 = vmatpush.msra.mxu3 %v392_v11 }
  0x51   :  { %416 = vmatpush.msra.mxu2 %v391_v12 }
  0x52   :  { %439 = vmatpush.msra.mxu3 %v391_v12 }
  0x53   :  { %417 = vmatpush.msra.mxu2 %v390_v13 }
  0x54   :  { %440 = vmatpush.msra.mxu3 %v390_v13 }
  0xba   :  { %v290_v19 = vpop.xlane.xlu0 %289 }
  0xbb   :  { %v291_v20 = vmul.f32 %v290_v19, %v219_v16 }
  0xbd   :  { %v296_v21 = vperm.slane %v291_v20, %v295_v17  ;;  %v300_v22 = vperm.slane %v291_v20, %v299_v18 }
  0xbf   :  { %v303_v23 = vsub.f32 %v277_v0, %v296_v21  ;;  %v304_v24 = vsub.f32 %v278_v1, %v300_v22  ;;  %v914_v22 = vld [vmem:[%s1497_s11] ss:$0 sm:$0xff] }
  0xc1   :  { %v305_v25 = vmul.f32 %v303_v23, %v303_v23  ;;  %v306_v26 = vmul.f32 %v304_v24, %v304_v24 }
  0xc2   :  { %v212_v27 = vpop.xlane.xlu0 %211 }
  0xc3   :  { %309 = vst [vmem:[#allocation1] ss:$2 sm:$0xff] %v305_v25  ;;  %v220_v28 = vmul.f32 %v219_v16, %v212_v27 }
  0xc4   :  { %311 = vst [vmem:[#allocation1 + $0x1] ss:$2 sm:$0xff] %v306_v26 }
  0xc5   :  { %v221_v29 = vsub.f32 %v206_v4, %v220_v28  ;;  %v910_v4 = vld [vmem:[%s1534_s3] ss:$0 sm:$0xff] }
  0xc7   :  { %v222_v32 = vmul.f32 %v221_v29, %v221_v29 }
  0xc9   :  { %v223_v33 = vsel %vm209_vm1, %v222_v32, 0.0  ;;  %v448_v32 = vld [vmem:[%s1508_s22 + $0x8] sm:$0xff] }
  0xcb   :  { %v312_v30 = vld.sshfl [vmem:[#allocation1] sm:$0xff pattern:$0x75316420] }
  0xcc   :  { %v314_v31 = vsel %vm252_vm0, %v312_v30, 0.0  ;;  %v450_v30 = vld [vmem:[%s1508_s22 + $0x18] sm:$0xff] }
  0xcd   :  { %315 = vadd.xlane.f32.xlu1 %v314_v31  ;;  %472 = vmatpush.msrb.mxu0 %v450_v30  ;;  %v449_v31 = vld [vmem:[%s1508_s22 + $0x10] sm:$0xff] }
  0xce   :  { %519 = vmatpush.msrb.mxu1 %v450_v30 }
  0xcf   :  { %473 = vmatpush.msrb.mxu0 %v449_v31 }
  0xd0   :  { %520 = vmatpush.msrb.mxu1 %v449_v31 }
  0xd1   :  { %474 = vmatpush.msrb.mxu0 %v448_v32 }
  0xd2   :  { %521 = vmatpush.msrb.mxu1 %v448_v32 }
  0xd5   :  { %224 = vadd.xlane.f32.xlu1 %v223_v33  ;;  %v447_v33 = vld [vmem:[%s1508_s22] sm:$0xff] }
  0xd6   :  { %475 = vmatpush.msrb.mxu0 %v447_v33  ;;  %522 = vmatpush.msrb.mxu1 %v447_v33 }
 0x140   :  { %v316_v34 = vpop.xlane.xlu1 %315 }
 0x141   :  { %v317_v36 = vmul.f32 %v316_v34, %v219_v16 }
 0x143   :  { %v318_v37 = vadd.f32 1e-05, %v317_v36 }
 0x145   :  { %925 = vrsqrt.f32 %v318_v37  ;;  %vm325_vm4 = vweird.f32 %v318_v37 }
 0x148   :  { %v225_v39 = vpop.xlane.xlu1 %224 }
 0x149   :  { %v226_v41 = vmul.f32 %v225_v39, %v219_v16  ;;  %v913_v16 = vld [vmem:[%s1495_s9] ss:$0 sm:$0xff]  ;;  %s1213_s9 = smov 96  }
 0x14b   :  { %v926_v42 = vpop.eup %925  ;;  %v227_v43 = vadd.f32 1e-05, %v226_v41 }
 0x14c   :  { %v320_v44 = vmul.f32 %v926_v42, %v318_v37  ;;  %vm326_vm3 = vweird.f32 %v926_v42 }
 0x14d   :  { %927 = vrsqrt.f32 %v227_v43  ;;  %vm327_vm5 = vmor %vm325_vm4, %vm326_vm3  ;;  %vm234_vm6 = vweird.f32 %v227_v43 }
 0x14e   :  { %v321_v45 = vmul.f32 %v926_v42, %v320_v44 }
 0x150   :  { %v322_v46 = vmul.f32 0.5, %v321_v45 }
 0x152   :  { %v323_v47 = vsub.f32 1.5, %v322_v46 }
 0x153   :  { %v928_v48 = vpop.eup %927 }
 0x154   :  { %v324_v50 = vmul.f32 %v926_v42, %v323_v47  ;;  %v229_v51 = vmul.f32 %v928_v48, %v227_v43  ;;  %vm235_vm7 = vweird.f32 %v928_v48 }
 0x155   :  { %vm236_vm8 = vmor %vm234_vm6, %vm235_vm7 }
 0x156   :  { %v328_v53 = vsel %vm327_vm5, %v926_v42, %v324_v50  ;;  %v230_v54 = vmul.f32 %v928_v48, %v229_v51 }
 0x157   :  { %v333_v56 = vperm.slane %v328_v53, %v295_v17  ;;  %v337_v57 = vperm.slane %v328_v53, %v299_v18 }
 0x158   :  { %v231_v58 = vmul.f32 0.5, %v230_v54 }
 0x159   :  { %v340_v60 = vmul.f32 %v333_v56, %v303_v23  ;;  %v341_v61 = vmul.f32 %v337_v57, %v304_v24 }
 0x15a   :  { %v232_v62 = vsub.f32 1.5, %v231_v58 }
 0x15b   :  { %v347_v63 = vmul.f32 %v908_v49, %v340_v60  ;;  %v348_v0 = vmul.f32 %v345_v55, %v341_v61 }
 0x15c   :  { %v233_v1 = vmul.f32 %v928_v48, %v232_v62 }
 0x15d   :  { %v354_v2 = vadd.f32 %v909_v52, %v347_v63  ;;  %v355_v3 = vadd.f32 %v352_v59, %v348_v0 }
 0x15e   :  { %v237_v5 = vsel %vm236_vm8, %v928_v48, %v233_v1 }
 0x15f   :  { %363 = vst [vmem:[#allocation1] ss:$2 sm:$0xff] %v354_v2  ;;  %v238_v6 = vmul.f32 %v237_v5, %v221_v29 }
 0x160   :  { %365 = vst [vmem:[#allocation1 + $0x1] ss:$2 sm:$0xff] %v355_v3 }
 0x161   :  { %v242_v8 = vmul.f32 %v910_v4, %v238_v6 }
 0x163   :  { %v246_v9 = vadd.f32 %v911_v7, %v242_v8  ;;  %v451_v8 = vld [vmem:[%s1509_s23] sm:$0xf] }
 0x164   :  { %883 = vmatpush.msk.msrb.mxu2 %vm592_vm12, %v451_v8  ;;  %885 = vmatpush.msk.msrb.mxu3 %vm592_vm12, %v451_v8 }
 0x165   :  { %877 = vmatmul.msk.f32.vlgmr.msra.gmra.mxu0 %vm252_vm0, %v246_v9 }
 0x167   :  { %v366_v10 = vld.sshfl [vmem:[#allocation1] sm:$0xff pattern:$0x75316420] }
 0x168   :  { %878 = vmatmul.msk.f32.vlgmr.msra.gmra.mxu1 %vm252_vm0, %v366_v10 }
 0x1e2   :  { %v273_v15 = vpop.f32.mrf.mxu0 }
 0x1e3   :  { %v1403_v17 = vadd.f32 %v912_v14, %v273_v15 }
 0x1e5   :  { %v276_v18 = vmax.f32 %v1403_v17, 0.0  ;;  %v386_v19 = vpop.f32.mrf.mxu1 }
 0x1e6   :  { %v387_v20 = vadd.f32 %v913_v16, %v386_v19 }
 0x1e7   :  { %879 = vmatmul.msk.f32.vlgmr.msra.gmra.mxu2 %vm398_vm9, %v276_v18 }
 0x1e8   :  { %v389_v21 = vmax.f32 %v387_v20, 0.0 }
 0x1ea   :  { %880 = vmatmul.msk.f32.vlgmr.msra.gmra.mxu3 %vm398_vm9, %v389_v21 }
 0x26a   :  { %v419_v23 = vpop.f32.mrf.mxu2 }
 0x26b   :  { %v420_v24 = vadd.f32 %v914_v22, %v419_v23 }
 0x26d   :  { %v442_v25 = vpop.f32.mrf.mxu3  ;;  %453 = vrot.lane.b32.xlu0 %v420_v24, %s1213_s9  ;;  %v482_v34 = vperm.slane %v420_v24, 0  ;;  %v481_v37 = vrot.slane %v420_v24, 1 }
 0x26e   :  { %v443_v26 = vadd.f32 %v914_v22, %v442_v25 }
 0x26f   :  { %v483_v38 = vperm.slane %v481_v37, 0 }
 0x270   :  { %v446_v27 = vrot.slane %v443_v26, 4  ;;  %486 = vst [vmem:[#allocation1] ss:$2 sm:$0xff] %v443_v26  ;;  %659 = vrot.lane.b32.xlu1 %v443_v26, %s1535_s24 }
 0x272   :  { %489 = vst [vmem:[#allocation1 + $0x10] ss:$2 sm:$0xff] %v446_v27 }
 0x277   :  { %v487_v28 = vld.sshfl [vmem:[#allocation1] sm:$0xff pattern:$0x75316420] }
 0x278   :  { %491 = vrot.lane.b32.xlu2 %v487_v28, %s1213_s9 }
 0x279   :  { %v490_v29 = vld.sshfl [vmem:[#allocation1 + $0x10] sm:$0xff pattern:$0x75316420] }
 0x280   :  { %493 = vrot.lane.b32.xlu2 %v490_v29, %s1213_s9  ;;  %s861_s9 = sshll.u32 %s1215_s28, 4  ;;  %s862_s9 = int_to_ptr.vmem [resolvable:$true] %s861_s9 }
 0x288   :  { %661 = vrot.lane.b32.xlu2 %v446_v27, %s1535_s24 }
 0x290   :  { %655 = vrot.lane.b32.xlu2 %v420_v24, %s1535_s24 }
 0x2d2   :  { %v492_v35 = vpop.permute.xlu2 %491 }
 0x2d3   :  { %v497_v36 = vmul.f32 %v492_v35, %v482_v34 }
 0x2d5   :  { %501 = vst [vmem:[#allocation1] ss:$2 sm:$0xff] %v497_v36 }
 0x2da   :  { %v494_v39 = vpop.permute.xlu2 %493 }
 0x2db   :  { %v498_v40 = vmul.f32 %v494_v39, %v483_v38 }
 0x2dd   :  { %503 = vst [vmem:[#allocation1 + $0x1] ss:$2 sm:$0xff] %v498_v40  ;;  %v690_v40 = vld [vmem:[#allocation14 + $0x18] sm:$0xff] }
 0x2de   :  { %710 = vmatpush.msra.mxu0 %v690_v40 }
 0x2df   :  { %v454_v41 = vpop.permute.xlu0 %453 }
 0x2e0   :  { %v456_v42 = vmul.f32 %v454_v41, %v420_v24  ;;  %v689_v41 = vld [vmem:[#allocation14 + $0x10] sm:$0xff] }
 0x2e1   :  { %711 = vmatpush.msra.mxu0 %v689_v41 }
 0x2e2   :  { %881 = vmatmul.msk.f32.vlgmr.msrb.gmra.mxu0 %vm398_vm9, %v456_v42  ;;  %v688_v42 = vld [vmem:[#allocation14 + $0x8] sm:$0xff] }
 0x2e3   :  { %712 = vmatpush.msra.mxu0 %v688_v42  ;;  %v918_v42 = vld [vmem:[%s1503_s17] ss:$0 sm:$0xff] }
 0x2e4   :  { %v504_v43 = vld.sshfl [vmem:[#allocation1] sm:$0xff pattern:$0x75316420] }
 0x2e5   :  { %882 = vmatmul.msk.f32.vlgmr.msrb.gmra.mxu1 %vm398_vm9, %v504_v43  ;;  %v687_v43 = vld [vmem:[#allocation14] sm:$0xff] }
 0x2e6   :  { %713 = vmatpush.msra.mxu0 %v687_v43 }
 0x35f   :  { %v477_v58 = vpop.f32.mrf.mxu0 }
 0x360   :  { %v480_v62 = vmul.f32 0.35355338, %v477_v58 }
 0x362   :  { %v524_v44 = vpop.f32.mrf.mxu1 }
 0x363   :  { %v527_v45 = vmul.f32 0.35355338, %v524_v44  ;;  %v660_v44 = vpop.permute.xlu1 %659 }
 0x365   :  { %v529_v46 = vrot.slane %v527_v45, 4  ;;  %v532_v47 = vsel %vm531_vm10, %v527_v45, -inf }
 0x366   :  { %v533_v48 = vrot.slane %v532_v47, 4 }
 0x367   :  { %v539_v49 = vsel %vm531_vm10, %v529_v46, -inf }
 0x368   :  { %v534_v50 = vmax.f32 %v532_v47, %v533_v48  ;;  %v540_v51 = vrot.slane %v539_v49, 4  ;;  %v662_v48 = vpop.permute.xlu2 %661 }
 0x36a   :  { %v535_v52 = vrot.slane %v534_v50, 2  ;;  %v541_v53 = vmax.f32 %v539_v49, %v540_v51 }
 0x36c   :  { %v536_v54 = vmax.f32 %v534_v50, %v535_v52  ;;  %v542_v55 = vrot.slane %v541_v53, 2 }
 0x36e   :  { %v537_v56 = vrot.slane %v536_v54, 1  ;;  %v543_v57 = vmax.f32 %v541_v53, %v542_v55 }
 0x370   :  { %v544_v59 = vrot.slane %v543_v57, 1  ;;  %v538_v60 = vmax.f32 %v536_v54, %v537_v56 }
 0x372   :  { %v545_v61 = vmax.f32 %v543_v57, %v544_v59 }
 0x374   :  { %v549_v63 = vsel %vm548_vm11, %v545_v61, %v538_v60 }
 0x375   :  { %v551_v0 = vmax.f32 %v480_v62, %v549_v63  ;;  %v656_v63 = vpop.permute.xlu2 %655 }
 0x377   :  { %v556_v1 = vrot.slane %v551_v0, 1  ;;  %v557_v2 = vperm.slane %v551_v0, 0  ;;  %v552_v12 = vsub.f32 %v480_v62, %v551_v0 }
 0x379   :  { %v558_v3 = vperm.slane %v556_v1, 0  ;;  %v561_v4 = vsub.f32 %v527_v45, %v557_v2  ;;  %v553_v19 = vmul.f32 1.442695, %v552_v12 }
 0x37b   :  { %v562_v5 = vsub.f32 %v529_v46, %v558_v3  ;;  %v563_v6 = vmul.f32 1.442695, %v561_v4 }
 0x37d   :  { %929 = vpow2.f32 %v563_v6  ;;  %v565_v7 = vmul.f32 1.442695, %v562_v5  ;;  %v915_v5 = vld [vmem:[%s1499_s13] ss:$0 sm:$0xff] }
 0x37f   :  { %931 = vpow2.f32 %v565_v7 }
 0x380   :  { %933 = vpow2.f32 %v553_v19 }
 0x383   :  { %v930_v9 = vpop.eup %929 }
 0x384   :  { %v567_v10 = vsel %vm531_vm10, %v930_v9, 0.0 }
 0x385   :  { %v932_v11 = vpop.eup %931  ;;  %v568_v13 = vrot.slane %v567_v10, 4 }
 0x386   :  { %v574_v14 = vsel %vm531_vm10, %v932_v11, 0.0  ;;  %v934_v29 = vpop.eup %933 }
 0x387   :  { %v569_v15 = vadd.f32 %v568_v13, %v567_v10  ;;  %v575_v16 = vrot.slane %v574_v14, 4 }
 0x389   :  { %v570_v20 = vrot.slane %v569_v15, 2  ;;  %v576_v21 = vadd.f32 %v575_v16, %v574_v14 }
 0x38b   :  { %v571_v22 = vadd.f32 %v570_v20, %v569_v15  ;;  %v577_v23 = vrot.slane %v576_v21, 2 }
 0x38d   :  { %v572_v24 = vrot.slane %v571_v22, 1  ;;  %v578_v25 = vadd.f32 %v577_v23, %v576_v21  ;;  %v761_v23 = vld [vmem:[#allocation16 + $0x18] sm:$0xff] }
 0x38e   :  { %781 = vmatpush.msra.mxu1 %v761_v23 }
 0x38f   :  { %v579_v26 = vrot.slane %v578_v25, 1  ;;  %v573_v27 = vadd.f32 %v572_v24, %v571_v22  ;;  %v760_v24 = vld [vmem:[#allocation16 + $0x10] sm:$0xff] }
 0x390   :  { %782 = vmatpush.msra.mxu1 %v760_v24 }
 0x391   :  { %v580_v28 = vadd.f32 %v579_v26, %v578_v25  ;;  %v759_v25 = vld [vmem:[#allocation16 + $0x8] sm:$0xff]  ;;  %v758_v26 = vld [vmem:[#allocation16] sm:$0xff] }
 0x392   :  { %783 = vmatpush.msra.mxu1 %v759_v25 }
 0x393   :  { %v583_v30 = vsel %vm548_vm11, %v580_v28, %v573_v27 }
 0x394   :  { %v585_v31 = vadd.f32 %v934_v29, %v583_v30  ;;  %784 = vmatpush.msra.mxu1 %v758_v26 }
 0x396   :  { %935 = vrcp.f32 %v585_v31 }
 0x39c   :  { %v936_v32 = vpop.eup %935 }
 0x39d   :  { %v617_v33 = vrot.slane %v936_v32, 1  ;;  %v618_v34 = vperm.slane %v936_v32, 0  ;;  %v587_v35 = vmul.f32 %v936_v32, %v934_v29 }
 0x39f   :  { %v619_v36 = vperm.slane %v617_v33, 0  ;;  %v622_v37 = vmul.f32 %v930_v9, %v618_v34  ;;  %884 = vmatmul.msk.f32.vlgmr.msrb.gmra.mxu2 %vm588_vm13, %v587_v35  ;;  %v1214_v9 = vmov 32.0  }
 0x3a0   :  { %937 = vrcp.f32 %v1214_v9 }
 0x3a1   :  { %v623_v38 = vmul.f32 %v932_v11, %v619_v36  ;;  %626 = vst [vmem:[#allocation1] ss:$2 sm:$0xff] %v622_v37  ;;  %v916_v36 = vld [vmem:[%s1500_s14] ss:$0 sm:$0xff] }
 0x3a3   :  { %628 = vst [vmem:[#allocation1 + $0x1] ss:$2 sm:$0xff] %v623_v38 }
 0x3a6   :  { %v938_v10 = vpop.eup %937 }
 0x3a7   :  { %v725_v11 = vmul.f32 32.0, %v938_v10  ;;  %vm729_vm0 = vweird.f32 %v938_v10 }
 0x3a9   :  { %v726_v12 = vsub.f32 1.0, %v725_v11 }
 0x3aa   :  { %v629_v39 = vld.sshfl [vmem:[#allocation1] sm:$0xff pattern:$0x75316420] }
 0x3ab   :  { %886 = vmatmul.msk.f32.vlgmr.msrb.gmra.mxu3 %vm588_vm13, %v629_v39  ;;  %v727_v13 = vmul.f32 %v938_v10, %v726_v12  ;;  %v917_v39 = vld [vmem:[%s1501_s15] ss:$0 sm:$0xff] }
 0x3ad   :  { %v728_v14 = vadd.f32 %v938_v10, %v727_v13 }
 0x3af   :  { %v1445_v15 = vsel %vm729_vm0, %v938_v10, %v728_v14 }
 0x422   :  { %v613_v61 = vpop.f32.mrf.mxu2 }
 0x423   :  { %v658_v2 = vmul.f32 %v656_v63, %v613_v61  ;;  %v919_v61 = vld [vmem:[%s1504_s18] ss:$0 sm:$0xff] }
 0x42e   :  { %v649_v45 = vpop.f32.mrf.mxu3 }
 0x42f   :  { %v653_v46 = vrot.slane %v649_v45, 4  ;;  %v665_v47 = vmul.f32 %v660_v44, %v649_v45 }
 0x431   :  { %v666_v49 = vmul.f32 %v662_v48, %v653_v46  ;;  %v668_v50 = vsel %vm667_vm14, %v665_v47, 0.0 }
 0x432   :  { %v669_v51 = vrot.slane %v668_v50, 4 }
 0x433   :  { %v675_v52 = vsel %vm667_vm14, %v666_v49, 0.0 }
 0x434   :  { %v670_v53 = vadd.f32 %v669_v51, %v668_v50  ;;  %v676_v54 = vrot.slane %v675_v52, 4 }
 0x436   :  { %v671_v55 = vrot.slane %v670_v53, 2  ;;  %v677_v56 = vadd.f32 %v676_v54, %v675_v52 }
 0x438   :  { %v672_v57 = vadd.f32 %v671_v55, %v670_v53  ;;  %v678_v58 = vrot.slane %v677_v56, 2 }
 0x43a   :  { %v673_v59 = vrot.slane %v672_v57, 1  ;;  %v679_v60 = vadd.f32 %v678_v58, %v677_v56 }
 0x43c   :  { %v680_v62 = vrot.slane %v679_v60, 1  ;;  %v674_v0 = vadd.f32 %v673_v59, %v672_v57 }
 0x43e   :  { %v681_v1 = vadd.f32 %v680_v62, %v679_v60 }
 0x440   :  { %v684_v3 = vsel %vm548_vm11, %v681_v1, %v674_v0  ;;  %v920_v0 = vld [vmem:[%s1505_s19] ss:$0 sm:$0xff] }
 0x441   :  { %v686_v4 = vadd.f32 %v684_v3, %v658_v2 }
 0x443   :  { %887 = vmatmul.msk.f32.vlgmr.msra.gmra.mxu0 %vm398_vm9, %v686_v4 }
 0x4c0   :  { %v715_v6 = vpop.f32.mrf.mxu0 }
 0x4c1   :  { %v716_v7 = vadd.f32 %v915_v5, %v715_v6 }
 0x4c3   :  { %v721_v8 = vsel %vm720_vm15, %v716_v7, 0.0 }
 0x4c4   :  { %722 = vadd.xlane.f32.xlu2 %v721_v8 }
 0x537   :  { %v723_v16 = vpop.xlane.xlu2 %722 }
 0x538   :  { %v731_v19 = vmul.f32 %v1445_v15, %v723_v16 }
 0x53a   :  { %v732_v20 = vsub.f32 %v716_v7, %v731_v19 }
 0x53c   :  { %v733_v21 = vmul.f32 %v732_v20, %v732_v20 }
 0x53e   :  { %v734_v22 = vsel %vm720_vm15, %v733_v21, 0.0 }
 0x53f   :  { %735 = vadd.xlane.f32.xlu0 %v734_v22 }
 0x5b2   :  { %v736_v27 = vpop.xlane.xlu0 %735 }
 0x5b3   :  { %v737_v28 = vmul.f32 %v736_v27, %v1445_v15 }
 0x5b5   :  { %v738_v29 = vadd.f32 1e-05, %v737_v28 }
 0x5b7   :  { %939 = vrsqrt.f32 %v738_v29  ;;  %vm745_vm2 = vweird.f32 %v738_v29 }
 0x5bd   :  { %v940_v30 = vpop.eup %939 }
 0x5be   :  { %v740_v31 = vmul.f32 %v940_v30, %v738_v29  ;;  %vm746_vm1 = vweird.f32 %v940_v30 }
 0x5bf   :  { %vm747_vm3 = vmor %vm745_vm2, %vm746_vm1 }
 0x5c0   :  { %v741_v32 = vmul.f32 %v940_v30, %v740_v31 }
 0x5c2   :  { %v742_v33 = vmul.f32 0.5, %v741_v32 }
 0x5c4   :  { %v743_v34 = vsub.f32 1.5, %v742_v33 }
 0x5c6   :  { %v744_v35 = vmul.f32 %v940_v30, %v743_v34 }
 0x5c8   :  { %v748_v37 = vsel %vm747_vm3, %v940_v30, %v744_v35 }
 0x5c9   :  { %v749_v38 = vmul.f32 %v748_v37, %v732_v20  ;;  %v921_v20 = vld [vmem:[%s1506_s20] ss:$0 sm:$0xff] }
 0x5cb   :  { %v753_v40 = vmul.f32 %v916_v36, %v749_v38 }
 0x5cd   :  { %v757_v41 = vadd.f32 %v917_v39, %v753_v40 }
 0x5cf   :  { %888 = vmatmul.msk.f32.vlgmr.msra.gmra.mxu1 %vm398_vm9, %v757_v41 }
 0x64c   :  { %v786_v43 = vpop.f32.mrf.mxu1 }
 0x64d   :  { %v787_v44 = vadd.f32 %v918_v42, %v786_v43 }
 0x64f   :  { %v789_v45 = vmax.f32 %v787_v44, 0.0 }
 0x651   :  { %v792_v46 = vsel %vm720_vm15, %v789_v45, 0.0 }
 0x652   :  { %793 = vadd.xlane.f32.xlu1 %v792_v46 }
 0x6c5   :  { %v794_v47 = vpop.xlane.xlu1 %793 }
 0x6c6   :  { %v795_v48 = vmul.f32 %v794_v47, %v1445_v15 }
 0x6c8   :  { %v796_v49 = vsub.f32 %v789_v45, %v795_v48 }
 0x6ca   :  { %v797_v50 = vmul.f32 %v796_v49, %v796_v49 }
 0x6cc   :  { %v798_v51 = vsel %vm720_vm15, %v797_v50, 0.0 }
 0x6cd   :  { %799 = vadd.xlane.f32.xlu2 %v798_v51 }
 0x740   :  { %v800_v52 = vpop.xlane.xlu2 %799 }
 0x741   :  { %v801_v53 = vmul.f32 %v800_v52, %v1445_v15 }
 0x743   :  { %v802_v54 = vadd.f32 1e-05, %v801_v53 }
 0x745   :  { %941 = vrsqrt.f32 %v802_v54  ;;  %vm809_vm5 = vweird.f32 %v802_v54 }
 0x74b   :  { %v942_v55 = vpop.eup %941 }
 0x74c   :  { %v804_v56 = vmul.f32 %v942_v55, %v802_v54  ;;  %vm810_vm4 = vweird.f32 %v942_v55 }
 0x74d   :  { %vm811_vm6 = vmor %vm809_vm5, %vm810_vm4 }
 0x74e   :  { %v805_v57 = vmul.f32 %v942_v55, %v804_v56 }
 0x750   :  { %v806_v58 = vmul.f32 0.5, %v805_v57 }
 0x752   :  { %v807_v59 = vsub.f32 1.5, %v806_v58 }
 0x754   :  { %v808_v60 = vmul.f32 %v942_v55, %v807_v59 }
 0x756   :  { %v812_v62 = vsel %vm811_vm6, %v942_v55, %v808_v60 }
 0x757   :  { %v813_v63 = vmul.f32 %v812_v62, %v796_v49 }
 0x759   :  { %v817_v1 = vmul.f32 %v919_v61, %v813_v63 }
 0x75b   :  { %v821_v2 = vadd.f32 %v920_v0, %v817_v1 }
 0x75d   :  { %v822_v3 = vadd.f32 %v821_v2, %v276_v18 }
 0x75f   :  { %v825_v4 = vsel %vm720_vm15, %v822_v3, 0.0 }
 0x760   :  { %826 = vadd.xlane.f32.xlu0 %v825_v4 }
 0x7d3   :  { %v827_v5 = vpop.xlane.xlu0 %826 }
 0x7d4   :  { %v828_v6 = vmul.f32 %v827_v5, %v1445_v15 }
 0x7d6   :  { %v829_v7 = vsub.f32 %v822_v3, %v828_v6 }
 0x7d8   :  { %v830_v8 = vmul.f32 %v829_v7, %v829_v7 }
 0x7da   :  { %v831_v9 = vsel %vm720_vm15, %v830_v8, 0.0 }
 0x7db   :  { %832 = vadd.xlane.f32.xlu2 %v831_v9 }
 0x84e   :  { %v833_v10 = vpop.xlane.xlu2 %832 }
 0x84f   :  { %v834_v11 = vmul.f32 %v833_v10, %v1445_v15  ;;  %v922_v15 = vld [vmem:[%s1536_s10] ss:$0 sm:$0xff] }
 0x851   :  { %v835_v12 = vadd.f32 1e-05, %v834_v11 }
 0x853   :  { %943 = vrsqrt.f32 %v835_v12  ;;  %vm842_vm8 = vweird.f32 %v835_v12 }
 0x859   :  { %v944_v13 = vpop.eup %943 }
 0x85a   :  { %v837_v14 = vmul.f32 %v944_v13, %v835_v12  ;;  %vm843_vm7 = vweird.f32 %v944_v13 }
 0x85b   :  { %vm844_vm9 = vmor %vm842_vm8, %vm843_vm7 }
 0x85c   :  { %v838_v17 = vmul.f32 %v944_v13, %v837_v14 }
 0x85e   :  { %v839_v18 = vmul.f32 0.5, %v838_v17 }
 0x860   :  { %v840_v16 = vsub.f32 1.5, %v839_v18 }
 0x862   :  { %v841_v19 = vmul.f32 %v944_v13, %v840_v16 }
 0x864   :  { %v845_v21 = vsel %vm844_vm9, %v944_v13, %v841_v19 }
 0x865   :  { %v846_v22 = vmul.f32 %v845_v21, %v829_v7 }
 0x867   :  { %v850_v23 = vmul.f32 %v921_v20, %v846_v22 }
 0x869   :  { %v854_v24 = vadd.f32 %v922_v15, %v850_v23 }
 0x86b   :  { %855 = vst.msk [vmem:[#allocation17] sm:$0x3] %vm720_vm15, %v854_v24 }
 0x86c   :  { %866 = dma.vmem_to_hbm [thread:$0]  %s862_s9, 32, %s864_s16, [#allocation4]  }
 0x86d   :  { %1195 = dma.done.wait [#allocation4], 32  }
 0x86e   :  { %1196 = vsyncadd [#allocation4], 4294967264 }
 0x86f   :  { %871 = vsyncpa [#allocation3], 1 }
 0x870   :  { %872 = vsyncpa [#allocation6], 1 }
 0x871   :  { %873 = vsyncpa [#allocation9], 1 }
 0x872   :  { %874 = vsyncpa [#allocation12], 1 }
 0x873   :  { %875 = vsyncpa [#allocation15], 1 }
 0x874   :  { %876 = vsyncpa [#allocation4], 1 }

</bundles_post_ra>
